<compile_context>
chip_gen: v7x
topology: tpu7x:2x2x1
jax: 0.10.0
libtpu: 0.0.40
codegen_flags: <defaults>
</compile_context>

<pallas_src>
import jax
import jax.numpy as jnp
from jax import lax
from jax.experimental import pallas as pl
from jax.experimental.pallas import tpu as pltpu


def _rodrigues_kernel(r_ref, o_ref):
    # r_ref: (3, TM, 128) VMEM, o_ref: (9, TM, 128) VMEM
    x = r_ref[0]                                  # (TM, 128) full vregs
    y = r_ref[1]
    z = r_ref[2]

    sumsq = 1e-5 + x * x + y * y + z * z          # (TM, 128)
    inv_t = lax.rsqrt(sumsq)                      # EUP rsqrt, no true divide
    theta = sumsq * inv_t                         # sqrt(sumsq) via the rsqrt

    x = x * inv_t
    y = y * inv_t
    z = z * inv_t

    c = jnp.cos(theta)
    s = jnp.sin(theta)
    omc = 1.0 - c

    # Hoist shared products once.
    xx = x * x
    yy = y * y
    zz = z * z
    xy = x * y * omc
    xz = x * z * omc
    yz = y * z * omc
    xs = x * s
    ys = y * s
    zs = z * s

    # Direct full-tile stores, one per rotation-matrix entry (row-major).
    o_ref[0] = c + xx * omc      # m00 = x^2 + (1 - x^2) c
    o_ref[1] = xy - zs           # m01
    o_ref[2] = xz + ys           # m02
    o_ref[3] = xy + zs           # m10
    o_ref[4] = c + yy * omc      # m11
    o_ref[5] = yz - xs           # m12
    o_ref[6] = xz - ys           # m20
    o_ref[7] = yz + xs           # m21
    o_ref[8] = c + zz * omc      # m22


def _rodrigues_ref(rvec):
    """Plain-JAX reference mirroring the PyTorch module (also the small-N path)."""
    theta = jnp.sqrt(1e-5 + jnp.sum(rvec ** 2, axis=1))
    r = rvec / theta[:, None]
    c = jnp.cos(theta)
    s = jnp.sin(theta)
    x, y, z = r[:, 0], r[:, 1], r[:, 2]
    m = jnp.stack(
        (
            x * x + (1.0 - x * x) * c,
            x * y * (1.0 - c) - z * s,
            x * z * (1.0 - c) + y * s,
            x * y * (1.0 - c) + z * s,
            y * y + (1.0 - y * y) * c,
            y * z * (1.0 - c) - x * s,
            x * z * (1.0 - c) - y * s,
            y * z * (1.0 - c) + x * s,
            z * z + (1.0 - z * z) * c,
        ),
        axis=1,
    )
    return m.reshape(-1, 3, 3)


def _round_up(a, m):
    return ((a + m - 1) // m) * m


def rodrigues(rvec, *, block_rows=2048, small_n_threshold=1024,
              use_pallas=None, packed=False):
    """rvec: (N, 3) float32 -> (N, 3, 3) float32.

    packed=True returns the component-major (9, N) slab instead (row-major
    rotation entries along axis 0), letting a downstream kernel consume the
    result without the final (9, N) -> (N, 3, 3) transpose.
    use_pallas=None auto-selects (plain JAX for N <= small_n_threshold).
    """
    rvec = jnp.asarray(rvec, dtype=jnp.float32)
    n = rvec.shape[0]

    if use_pallas is None:
        use_pallas = n > small_n_threshold
    if not use_pallas:
        out = _rodrigues_ref(rvec)
        if packed:
            return out.reshape(n, 9).T
        return out

    # ---- tiling: batch packed onto sublanes AND lanes -> (Mp, 128) rows ----
    mp0 = max(1, -(-n // 128))          # rows of 128 lanes needed
    mp0 = _round_up(mp0, 8)             # sublane-align

    # Grid length: enough steps that each tile fits block_rows, and >= 2
    # whenever there is room, so v7x's two TensorCores both get work.
    g = -(-mp0 // block_rows)
    if mp0 >= 16:
        g = max(g, 2)

    # Near-even split rounded to sublanes -> padding is at most 7 rows.
    tm = _round_up(-(-mp0 // g), 8)
    mp = g * tm
    n_pad = mp * 128

    # Single pad-after-transpose copy on the input side; padded lanes compute
    # finite near-identity garbage (1e-5 guards the sqrt) and are sliced off.
    r = jnp.pad(rvec.T, ((0, 0), (0, n_pad - n))).reshape(3, mp, 128)

    # Explicit scoped-VMEM limit so block_rows=2048 (24 MiB double-buffered)
    # also compiles on v5e's 16 MiB default; never shrink below 32 MiB.
    block_bytes = (3 + 9) * tm * 128 * 4
    vmem_limit = min(64 << 20, max(32 << 20, 2 * block_bytes + (4 << 20)))

    out = pl.pallas_call(
        _rodrigues_kernel,
        out_shape=jax.ShapeDtypeStruct((9, mp, 128), jnp.float32),
        grid_spec=pltpu.PrefetchScalarGridSpec(
            num_scalar_prefetch=0,
            grid=(g,),
            in_specs=[pl.BlockSpec((3, tm, 128), lambda i: (0, i, 0))],
            out_specs=pl.BlockSpec((9, tm, 128), lambda i: (0, i, 0)),
        ),
        compiler_params=pltpu.CompilerParams(
            dimension_semantics=("parallel",),
            vmem_limit_bytes=vmem_limit),
    )(r)

    out = out.reshape(9, n_pad)[:, :n]            # packed (9, N)
    if packed:
        return out
    # PyTorch convention: torch.stack(dim=1).view(-1, 3, 3) -> (N, 3, 3).
    return out.T.reshape(n, 3, 3)


if __name__ == "__main__":
    key = jax.random.PRNGKey(0)

    # 1) Typical small workload (24 joints): auto-dispatches to the fused
    #    plain-JAX path.
    r_small = jax.random.normal(key, (24, 3), dtype=jnp.float32)
    out_small = jax.block_until_ready(rodrigues(r_small))
    assert out_small.shape == (24, 3, 3)
    assert jnp.allclose(out_small, _rodrigues_ref(r_small), atol=1e-5, rtol=1e-5)

    # 2) Forced Pallas path, single tile, N not a multiple of 128.
    r_mid = jax.random.normal(jax.random.PRNGKey(1), (40, 3), dtype=jnp.float32)
    out_mid = jax.block_until_ready(rodrigues(r_mid, use_pallas=True))
    assert out_mid.shape == (40, 3, 3)
    assert jnp.allclose(out_mid, _rodrigues_ref(r_mid), atol=1e-5, rtol=1e-5)

    # 3) Pallas path with a multi-step grid (mp0 = 24 rows -> 2 tiles of 16),
    #    N not a multiple of 128; also check the packed (9, N) output.
    r_big = jax.random.normal(jax.random.PRNGKey(2), (3000, 3), dtype=jnp.float32)
    out_big = jax.block_until_ready(rodrigues(r_big))
    ref_big = _rodrigues_ref(r_big)
    assert out_big.shape == (3000, 3, 3)
    assert jnp.allclose(out_big, ref_big, atol=1e-5, rtol=1e-5)

    out_packed = jax.block_until_ready(rodrigues(r_big, packed=True))
    assert out_packed.shape == (9, 3000)
    assert jnp.allclose(out_packed, ref_big.reshape(3000, 9).T,
                        atol=1e-5, rtol=1e-5)

    print("KERNEL_OK")
</pallas_src>

<mosaic_0001>
module attributes {stable_mosaic.version = 11 : i64} {
  func.func @_rodrigues_kernel(%arg0: i32, %arg1: memref<3x8x128xf32, #tpu.memory_space<vmem>>, %arg2: memref<9x8x128xf32, #tpu.memory_space<vmem>>) attributes {dimension_semantics = [#tpu.dimension_semantics<parallel>], iteration_bounds = array<i64: 1>, scalar_prefetch = 0 : i64, scratch_operands = 0 : i64, tpu.core_type = #tpu.core_type<tc>, window_params = [{transform_indices = @transform_0, window_bounds = array<i64: 3, 8, 128>}, {transform_indices = @transform_1, window_bounds = array<i64: 9, 8, 128>}]} {
    %c0 = arith.constant 0 : index
    %c0_0 = arith.constant 0 : index
    %c0_1 = arith.constant 0 : index
    %0 = vector.load %arg1[%c0, %c0_0, %c0_1] : memref<3x8x128xf32, #tpu.memory_space<vmem>>, vector<1x8x128xf32>
    %1 = vector.shape_cast %0 : vector<1x8x128xf32> to vector<8x128xf32>
    %c1 = arith.constant 1 : index
    %c0_2 = arith.constant 0 : index
    %c0_3 = arith.constant 0 : index
    %2 = vector.load %arg1[%c1, %c0_2, %c0_3] : memref<3x8x128xf32, #tpu.memory_space<vmem>>, vector<1x8x128xf32>
    %3 = vector.shape_cast %2 : vector<1x8x128xf32> to vector<8x128xf32>
    %c2 = arith.constant 2 : index
    %c0_4 = arith.constant 0 : index
    %c0_5 = arith.constant 0 : index
    %4 = vector.load %arg1[%c2, %c0_4, %c0_5] : memref<3x8x128xf32, #tpu.memory_space<vmem>>, vector<1x8x128xf32>
    %5 = vector.shape_cast %4 : vector<1x8x128xf32> to vector<8x128xf32>
    %6 = arith.mulf %1, %1 : vector<8x128xf32>
    %cst = arith.constant 9.99999974E-6 : f32
    %7 = vector.broadcast %cst : f32 to vector<8x128xf32>
    %8 = arith.addf %7, %6 : vector<8x128xf32>
    %9 = arith.mulf %3, %3 : vector<8x128xf32>
    %10 = arith.addf %8, %9 : vector<8x128xf32>
    %11 = arith.mulf %5, %5 : vector<8x128xf32>
    %12 = arith.addf %10, %11 : vector<8x128xf32>
    %13 = math.rsqrt %12 : vector<8x128xf32>
    %14 = arith.mulf %12, %13 : vector<8x128xf32>
    %15 = arith.mulf %1, %13 : vector<8x128xf32>
    %16 = arith.mulf %3, %13 : vector<8x128xf32>
    %17 = arith.mulf %5, %13 : vector<8x128xf32>
    %18 = math.cos %14 : vector<8x128xf32>
    %19 = math.sin %14 : vector<8x128xf32>
    %cst_6 = arith.constant 1.000000e+00 : f32
    %20 = vector.broadcast %cst_6 : f32 to vector<8x128xf32>
    %21 = arith.subf %20, %18 : vector<8x128xf32>
    %22 = arith.mulf %15, %15 : vector<8x128xf32>
    %23 = arith.mulf %16, %16 : vector<8x128xf32>
    %24 = arith.mulf %17, %17 : vector<8x128xf32>
    %25 = arith.mulf %15, %16 : vector<8x128xf32>
    %26 = arith.mulf %25, %21 : vector<8x128xf32>
    %27 = arith.mulf %15, %17 : vector<8x128xf32>
    %28 = arith.mulf %27, %21 : vector<8x128xf32>
    %29 = arith.mulf %16, %17 : vector<8x128xf32>
    %30 = arith.mulf %29, %21 : vector<8x128xf32>
    %31 = arith.mulf %15, %19 : vector<8x128xf32>
    %32 = arith.mulf %16, %19 : vector<8x128xf32>
    %33 = arith.mulf %17, %19 : vector<8x128xf32>
    %34 = arith.mulf %22, %21 : vector<8x128xf32>
    %35 = arith.addf %18, %34 : vector<8x128xf32>
    %c0_7 = arith.constant 0 : index
    %c0_8 = arith.constant 0 : index
    %c0_9 = arith.constant 0 : index
    %36 = vector.load %arg2[%c0_7, %c0_8, %c0_9] : memref<9x8x128xf32, #tpu.memory_space<vmem>>, vector<1x8x128xf32>
    %37 = vector.shape_cast %36 : vector<1x8x128xf32> to vector<8x128xf32>
    %38 = vector.shape_cast %35 : vector<8x128xf32> to vector<1x8x128xf32>
    tpu.vector_store %arg2[%c0_7, %c0_8, %c0_9], %38 {strides = array<i32>} : memref<9x8x128xf32, #tpu.memory_space<vmem>>, vector<1x8x128xf32>,
    %39 = arith.subf %26, %33 : vector<8x128xf32>
    %c1_10 = arith.constant 1 : index
    %c0_11 = arith.constant 0 : index
    %c0_12 = arith.constant 0 : index
    %40 = vector.load %arg2[%c1_10, %c0_11, %c0_12] : memref<9x8x128xf32, #tpu.memory_space<vmem>>, vector<1x8x128xf32>
    %41 = vector.shape_cast %40 : vector<1x8x128xf32> to vector<8x128xf32>
    %42 = vector.shape_cast %39 : vector<8x128xf32> to vector<1x8x128xf32>
    tpu.vector_store %arg2[%c1_10, %c0_11, %c0_12], %42 {strides = array<i32>} : memref<9x8x128xf32, #tpu.memory_space<vmem>>, vector<1x8x128xf32>,
    %43 = arith.addf %28, %32 : vector<8x128xf32>
    %c2_13 = arith.constant 2 : index
    %c0_14 = arith.constant 0 : index
    %c0_15 = arith.constant 0 : index
    %44 = vector.load %arg2[%c2_13, %c0_14, %c0_15] : memref<9x8x128xf32, #tpu.memory_space<vmem>>, vector<1x8x128xf32>
    %45 = vector.shape_cast %44 : vector<1x8x128xf32> to vector<8x128xf32>
    %46 = vector.shape_cast %43 : vector<8x128xf32> to vector<1x8x128xf32>
    tpu.vector_store %arg2[%c2_13, %c0_14, %c0_15], %46 {strides = array<i32>} : memref<9x8x128xf32, #tpu.memory_space<vmem>>, vector<1x8x128xf32>,
    %47 = arith.addf %26, %33 : vector<8x128xf32>
    %c3 = arith.constant 3 : index
    %c0_16 = arith.constant 0 : index
    %c0_17 = arith.constant 0 : index
    %48 = vector.load %arg2[%c3, %c0_16, %c0_17] : memref<9x8x128xf32, #tpu.memory_space<vmem>>, vector<1x8x128xf32>
    %49 = vector.shape_cast %48 : vector<1x8x128xf32> to vector<8x128xf32>
    %50 = vector.shape_cast %47 : vector<8x128xf32> to vector<1x8x128xf32>
    tpu.vector_store %arg2[%c3, %c0_16, %c0_17], %50 {strides = array<i32>} : memref<9x8x128xf32, #tpu.memory_space<vmem>>, vector<1x8x128xf32>,
    %51 = arith.mulf %23, %21 : vector<8x128xf32>
    %52 = arith.addf %18, %51 : vector<8x128xf32>
    %c4 = arith.constant 4 : index
    %c0_18 = arith.constant 0 : index
    %c0_19 = arith.constant 0 : index
    %53 = vector.load %arg2[%c4, %c0_18, %c0_19] : memref<9x8x128xf32, #tpu.memory_space<vmem>>, vector<1x8x128xf32>
    %54 = vector.shape_cast %53 : vector<1x8x128xf32> to vector<8x128xf32>
    %55 = vector.shape_cast %52 : vector<8x128xf32> to vector<1x8x128xf32>
    tpu.vector_store %arg2[%c4, %c0_18, %c0_19], %55 {strides = array<i32>} : memref<9x8x128xf32, #tpu.memory_space<vmem>>, vector<1x8x128xf32>,
    %56 = arith.subf %30, %31 : vector<8x128xf32>
    %c5 = arith.constant 5 : index
    %c0_20 = arith.constant 0 : index
    %c0_21 = arith.constant 0 : index
    %57 = vector.load %arg2[%c5, %c0_20, %c0_21] : memref<9x8x128xf32, #tpu.memory_space<vmem>>, vector<1x8x128xf32>
    %58 = vector.shape_cast %57 : vector<1x8x128xf32> to vector<8x128xf32>
    %59 = vector.shape_cast %56 : vector<8x128xf32> to vector<1x8x128xf32>
    tpu.vector_store %arg2[%c5, %c0_20, %c0_21], %59 {strides = array<i32>} : memref<9x8x128xf32, #tpu.memory_space<vmem>>, vector<1x8x128xf32>,
    %60 = arith.subf %28, %32 : vector<8x128xf32>
    %c6 = arith.constant 6 : index
    %c0_22 = arith.constant 0 : index
    %c0_23 = arith.constant 0 : index
    %61 = vector.load %arg2[%c6, %c0_22, %c0_23] : memref<9x8x128xf32, #tpu.memory_space<vmem>>, vector<1x8x128xf32>
    %62 = vector.shape_cast %61 : vector<1x8x128xf32> to vector<8x128xf32>
    %63 = vector.shape_cast %60 : vector<8x128xf32> to vector<1x8x128xf32>
    tpu.vector_store %arg2[%c6, %c0_22, %c0_23], %63 {strides = array<i32>} : memref<9x8x128xf32, #tpu.memory_space<vmem>>, vector<1x8x128xf32>,
    %64 = arith.addf %30, %31 : vector<8x128xf32>
    %c7 = arith.constant 7 : index
    %c0_24 = arith.constant 0 : index
    %c0_25 = arith.constant 0 : index
    %65 = vector.load %arg2[%c7, %c0_24, %c0_25] : memref<9x8x128xf32, #tpu.memory_space<vmem>>, vector<1x8x128xf32>
    %66 = vector.shape_cast %65 : vector<1x8x128xf32> to vector<8x128xf32>
    %67 = vector.shape_cast %64 : vector<8x128xf32> to vector<1x8x128xf32>
    tpu.vector_store %arg2[%c7, %c0_24, %c0_25], %67 {strides = array<i32>} : memref<9x8x128xf32, #tpu.memory_space<vmem>>, vector<1x8x128xf32>,
    %68 = arith.mulf %24, %21 : vector<8x128xf32>
    %69 = arith.addf %18, %68 : vector<8x128xf32>
    %c8 = arith.constant 8 : index
    %c0_26 = arith.constant 0 : index
    %c0_27 = arith.constant 0 : index
    %70 = vector.load %arg2[%c8, %c0_26, %c0_27] : memref<9x8x128xf32, #tpu.memory_space<vmem>>, vector<1x8x128xf32>
    %71 = vector.shape_cast %70 : vector<1x8x128xf32> to vector<8x128xf32>
    %72 = vector.shape_cast %69 : vector<8x128xf32> to vector<1x8x128xf32>
    tpu.vector_store %arg2[%c8, %c0_26, %c0_27], %72 {strides = array<i32>} : memref<9x8x128xf32, #tpu.memory_space<vmem>>, vector<1x8x128xf32>,
    return
  }
  func.func @transform_0(%arg0: i32) -> (i32, i32, i32) {
    %c0_i32 = arith.constant 0 : i32
    %c0_i32_0 = arith.constant 0 : i32
    %c0_i32_1 = arith.constant 0 : i32
    return %c0_i32, %arg0, %c0_i32_0 : i32, i32, i32
  }
  func.func @transform_1(%arg0: i32) -> (i32, i32, i32) {
    %c0_i32 = arith.constant 0 : i32
    %c0_i32_0 = arith.constant 0 : i32
    %c0_i32_1 = arith.constant 0 : i32
    return %c0_i32, %arg0, %c0_i32_0 : i32, i32, i32
  }
}

</mosaic_0001>

<bundles_post_ra>
// kernel: tpu_custom_call.1
= control target key start
LH: loop header
LB: loop body
LE: loop exit
PB: predicated region body
PF: predicated region fallthrough
CT: control target
= control target key end

     0   :  { %6 = vsyncpa [#allocation3], 0  ;;  %s482_s0 = inlined_call_operand.hbm [shape: f32[3,8,128], index: 0, kind: input, shape index: {}]   ;;  %s483_s1 = inlined_call_operand.hbm [shape: f32[9,8,128], index: 1, kind: output, shape index: {}]  }
   0x1   :  { %7 = vsyncpa [#allocation4], 0  ;;  %s381_s6 = smov [#allocation2]   ;;  %s333_s10 = scalar_lea.hbm %s482_s0, 384 }
   0x2   :  { %s13_s7 = sshll.u32 %s381_s6, 4  ;;  %p334_p0 = scmp.ne.s32.totalorder %s482_s0, %s333_s10  ;;  %s14_s7 = int_to_ptr.vmem [resolvable:$true] %s13_s7 }
   0x3   :  { %p337_p1 = scmp.lt.u32.totalorder %s333_s10, %s482_s0 }
   0x5   :  { %p339_p2 = pnand %p337_p1, %p334_p0 }
   0x7   :  { %342 = shalt.err (!%p339_p2)
}
   0x8   :  { %s343_s15 = scalar_lea.vmem %s14_s7, 384  ;;  %p348_p4 = scmp.lt.s32.totalorder %s14_s7, %s14_s7 }
   0x9   :  { %p344_p3 = scmp.ne.s32.totalorder %s14_s7, %s343_s15  ;;  %p349_p5 = scmp.lt.s32.totalorder %s343_s15, %s343_s15 }
   0xb   :  { %p350_p6 = por %p349_p5, %p348_p4 }
   0xd   :  { %p351_p7 = pnand %p350_p6, %p344_p3 }
   0xf   :  { %354 = shalt.err (!%p351_p7)
}
  0x10   :  { %s382_s16 = smov 128   ;;  %s383_s17 = smov 8  }
  0x11   :  { %19 = dma.hbm_to_vmem [thread:$0]  %s482_s0, 384, %s14_s7, [#allocation3], %s382_s16, %s382_s16, %s383_s17  }
  0x12   :  { %377 = dma.done.wait [#allocation3], 384  }
  0x13   :  { %378 = vsyncadd [#allocation3], 4294966912  ;;  %v23_v0 = vld [vmem:[#allocation2] sm:$0xff]  ;;  %v25_v1 = vld [vmem:[#allocation2 + $0x8] sm:$0xff]  ;;  %v384_v28 = vmov 683565275  }
  0x14   :  { %v27_v2 = vld [vmem:[#allocation2 + $0x10] sm:$0xff]  ;;  %v28_v3 = vmul.f32 %v23_v0, %v23_v0  ;;  %v30_v4 = vmul.f32 %v25_v1, %v25_v1  ;;  %v385_v30 = vmov 2475754826   ;;  %v386_v32 = vmov 2131351028   ;;  %s390_s0 = smov [#allocation5]  }
  0x15   :  { %v32_v6 = vmul.f32 %v27_v2, %v27_v2  ;;  %v387_v34 = vmov 2102212464   ;;  %v388_v36 = vmov 920167782   ;;  %v389_v43 = vmov 1326507024  }
  0x16   :  { %v29_v5 = vadd.f32 1e-05, %v28_v3  ;;  %s293_s20 = sshll.u32 %s390_s0, 4  ;;  %s294_s20 = int_to_ptr.vmem [resolvable:$true] %s293_s20 }
  0x17   :  { %s355_s21 = scalar_lea.vmem %s294_s20, 1152  ;;  %p360_p9 = scmp.lt.s32.totalorder %s294_s20, %s294_s20 }
  0x18   :  { %v31_v7 = vadd.f32 %v30_v4, %v29_v5  ;;  %p356_p8 = scmp.ne.s32.totalorder %s294_s20, %s355_s21  ;;  %p361_p10 = scmp.lt.s32.totalorder %s355_s21, %s355_s21 }
  0x1a   :  { %v33_v8 = vadd.f32 %v32_v6, %v31_v7  ;;  %p362_p11 = por %p361_p10, %p360_p9 }
  0x1c   :  { %327 = vrsqrt.f32 %v33_v8  ;;  %p363_p12 = pnand %p362_p11, %p356_p8 }
  0x26   :  { %v328_v9 = vpop.eup %327 }
  0x27   :  { %v416_v10 = vmul.f32 %v328_v9, %v33_v8  ;;  %v418_v11 = vmul.f32 %v328_v9, %v23_v0  ;;  %v420_v12 = vmul.f32 %v328_v9, %v25_v1  ;;  %v422_v13 = vmul.f32 %v328_v9, %v27_v2 }
  0x29   :  { %v42_v14 = vand.u32 2139095040, %v416_v10  ;;  %v427_v15 = vmul.f32 %v420_v12, %v418_v11  ;;  %v431_v16 = vmul.f32 %v422_v13, %v418_v11  ;;  %v435_v18 = vmul.f32 %v422_v13, %v420_v12 }
  0x2a   :  { %v39_v19 = vand.u32 2147483647, %v416_v10  ;;  %vm41_vm7 = vcmp.lt.s32.totalorder %v416_v10, 0  ;;  %vm131_vm15 = vweird.f32 %v416_v10 }
  0x2b   :  { %v43_v17 = vshrl.u32 %v42_v14, 23 }
  0x2c   :  { %v46_v22 = vand.u32 8388607, %v39_v19  ;;  %vm40_vm8 = vcmp.le.f32.partialorder %v39_v19, 0.7853982 }
  0x2d   :  { %v305_v20 = vadd.s32 4294967169, %v43_v17 }
  0x2e   :  { %v47_v25 = vor.u32 8388608, %v46_v22 }
  0x2f   :  { %v49_v21 = vadd.s32 1, %v305_v20 }
  0x30   :  { %v87_v45 = vshll.u32 %v47_v25, 8 }
  0x31   :  { %vm50_vm0 = vcmp.gt.s32.totalorder %v49_v21, 0 }
  0x32   :  { %v51_v23 = vsel %vm50_vm0, %v49_v21, 0 }
  0x33   :  { %v53_v24 = vand.u32 31, %v51_v23  ;;  %v52_v26 = vshrl.u32 %v51_v23, 5 }
  0x35   :  { %v54_v27 = vsub.s32 32, %v53_v24  ;;  %v56_v29 = vshll.u32 %v384_v28, %v53_v24  ;;  %v59_v31 = vshll.u32 %v385_v30, %v53_v24  ;;  %v62_v33 = vshll.u32 %v386_v32, %v53_v24 }
  0x36   :  { %v65_v35 = vshll.u32 %v387_v34, %v53_v24  ;;  %v68_v37 = vshll.u32 %v388_v36, %v53_v24  ;;  %vm71_vm1 = vcmp.lt.s32.totalorder %v52_v26, 1  ;;  %vm74_vm2 = vcmp.lt.s32.totalorder %v52_v26, 4 }
  0x37   :  { %v55_v38 = vshrl.u32 %v384_v28, %v54_v27  ;;  %v57_v39 = vshrl.u32 %v385_v30, %v54_v27  ;;  %v60_v40 = vshrl.u32 %v386_v32, %v54_v27  ;;  %v63_v41 = vshrl.u32 %v387_v34, %v54_v27 }
  0x38   :  { %v66_v42 = vshrl.u32 %v388_v36, %v54_v27  ;;  %v69_v44 = vshrl.u32 %v389_v43, %v54_v27  ;;  %vm72_vm3 = vcmp.lt.s32.totalorder %v52_v26, 2  ;;  %vm73_vm4 = vcmp.lt.s32.totalorder %v52_v26, 3 }
  0x39   :  { %v58_v46 = vor.u32 %v57_v39, %v56_v29  ;;  %v61_v47 = vor.u32 %v60_v40, %v59_v31  ;;  %v64_v48 = vor.u32 %v63_v41, %v62_v33 }
  0x3a   :  { %v67_v49 = vor.u32 %v66_v42, %v65_v35  ;;  %v70_v50 = vor.u32 %v69_v44, %v68_v37 }
  0x3b   :  { %v75_v51 = vsel %vm71_vm1, %v55_v38, %v58_v46  ;;  %v76_v52 = vsel %vm74_vm2, %v64_v48, 2102212464  ;;  %v79_v53 = vsel %vm71_vm1, %v58_v46, %v61_v47  ;;  %v83_v54 = vsel %vm71_vm1, %v61_v47, %v64_v48 }
  0x3c   :  { %v77_v55 = vsel %vm73_vm4, %v61_v47, %v76_v52  ;;  %v80_v56 = vsel %vm74_vm2, %v67_v49, 920167782  ;;  %v84_v57 = vsel %vm74_vm2, %v70_v50, 1326507024 }
  0x3d   :  { %v81_v58 = vsel %vm73_vm4, %v64_v48, %v80_v56  ;;  %v85_v59 = vsel %vm73_vm4, %v67_v49, %v84_v57  ;;  %v78_v60 = vsel %vm72_vm3, %v75_v51, %v77_v55  ;;  %v248_v55 = vmul.f32 %v420_v12, %v420_v12 }
  0x3e   :  { %v82_v61 = vsel %vm72_vm3, %v79_v53, %v81_v58  ;;  %v86_v62 = vsel %vm72_vm3, %v83_v54, %v85_v59  ;;  %v94_v3 = vmul.u32 %v87_v45, %v78_v60  ;;  %v247_v53 = vmul.f32 %v418_v11, %v418_v11 }
  0x3f   :  { %v440_v63 = vmul.u32.u64.low %v87_v45, %v86_v62  ;;  %v441_v0 = vmul.u32.u64.high %v87_v45, %v86_v62, %v440_v63  ;;  %v443_v1 = vmul.u32.u64.low %v87_v45, %v82_v61  ;;  %v444_v2 = vmul.u32.u64.high %v87_v45, %v82_v61, %v443_v1 }
  0x40   :  { %v249_v58 = vmul.f32 %v422_v13, %v422_v13 }
  0x41   :  { %vm96_vm5 = vc.u32 %v441_v0, %v443_v1  ;;  %v97_v4 = vadd.s32 1, %v444_v2  ;;  %v95_v23 = vadd.s32 %v443_v1, %v441_v0 }
  0x43   :  { %v98_v5 = vsel %vm96_vm5, %v97_v4, %v444_v2 }
  0x44   :  { %v99_v6 = vadd.s32 %v98_v5, %v94_v3 }
  0x46   :  { %v100_v7 = vadd.s32 536870912, %v99_v6 }
  0x48   :  { %v101_v8 = vshrl.u32 %v100_v7, 30 }
  0x4a   :  { %v102_v9 = vshll.u32 %v101_v8, 30  ;;  %v125_v35 = vsub.s32 4, %v101_v8 }
  0x4c   :  { %v103_v14 = vsub.s32 %v99_v6, %v102_v9  ;;  %v126_v38 = vsel %vm41_vm7, %v125_v35, %v101_v8 }
  0x4d   :  { %v128_v41 = vsel %vm40_vm8, 0, %v126_v38 }
  0x4e   :  { %v105_v17 = vsub.s32 0, %v103_v14  ;;  %v235_v42 = vadd.s32 3, %v128_v41  ;;  %v132_v43 = vand.u32 3, %v128_v41 }
  0x50   :  { %v306_v20 = vmin.u32 %v105_v17, %v103_v14  ;;  %v236_v44 = vand.u32 3, %v235_v42  ;;  %vm137_vm9 = vcmp.eq.s32.totalorder %v132_v43, 2  ;;  %vm134_vm11 = vcmp.eq.s32.totalorder %v132_v43, 0 }
  0x51   :  { %vm133_vm13 = vcmp.lt.s32.totalorder %v132_v43, 2 }
  0x52   :  { %v107_v21 = vclz %v306_v20  ;;  %vm241_vm10 = vcmp.eq.s32.totalorder %v236_v44, 2  ;;  %vm238_vm12 = vcmp.eq.s32.totalorder %v236_v44, 0  ;;  %vm237_vm14 = vcmp.lt.s32.totalorder %v236_v44, 2 }
  0x54   :  { %v307_v22 = vadd.s32 4294967294, %v107_v21 }
  0x56   :  { %vm308_vm6 = vcmp.lt.s32.totalorder %v307_v22, 0 }
  0x57   :  { %v110_v24 = vsel %vm308_vm6, 0, %v307_v22 }
  0x58   :  { %v111_v25 = vsub.s32 32, %v110_v24  ;;  %v112_v26 = vshll.u32 %v103_v14, %v110_v24  ;;  %v115_v27 = vsub.s32 4294967266, %v110_v24 }
  0x5a   :  { %v113_v28 = vshrl.u32 %v95_v23, %v111_v25  ;;  %v116_v29 = vadd.s32 127, %v115_v27 }
  0x5c   :  { %v114_v30 = vor.u32 %v113_v28, %v112_v26  ;;  %v117_v31 = vshll.u32 %v116_v29, 23 }
  0x5e   :  { %v118_v32 = vor.u32 4788187, %v117_v31  ;;  %v121_v33 = vcvt.s32.f32 %v114_v30 }
  0x60   :  { %v119_v34 = vand.u32 2147483647, %v118_v32 }
  0x62   :  { %v122_v36 = vmul.f32 %v121_v33, %v119_v34 }
  0x64   :  { %v123_v37 = vxor.u32 2147483648, %v122_v36 }
  0x66   :  { %v124_v39 = vsel %vm41_vm7, %v123_v37, %v122_v36 }
  0x67   :  { %v127_v40 = vsel %vm40_vm8, %v416_v10, %v124_v39 }
  0x68   :  { %329 = vcosq.f32 %v127_v40 }
  0x69   :  { %331 = vsinq.f32 %v127_v40 }
  0x72   :  { %v330_v45 = vpop.eup %329 }
  0x73   :  { %v332_v46 = vpop.eup %331  ;;  %v138_v47 = vxor.u32 2147483648, %v330_v45 }
  0x74   :  { %v135_v19 = vxor.u32 2147483648, %v332_v46 }
  0x75   :  { %v139_v48 = vsel %vm137_vm9, %v138_v47, %v332_v46  ;;  %v243_v49 = vsel %vm241_vm10, %v138_v47, %v332_v46 }
  0x76   :  { %v136_v50 = vsel %vm134_vm11, %v330_v45, %v135_v19  ;;  %v240_v51 = vsel %vm238_vm12, %v330_v45, %v135_v19 }
  0x77   :  { %v140_v52 = vsel %vm133_vm13, %v136_v50, %v139_v48  ;;  %v244_v54 = vsel %vm237_vm14, %v240_v51, %v243_v49 }
  0x78   :  { %v141_v56 = vsel %vm131_vm15, nan, %v140_v52  ;;  %v245_v57 = vsel %vm131_vm15, nan, %v244_v54 }
  0x79   :  { %v246_v59 = vsub.f32 1.0, %v141_v56  ;;  %v258_v10 = vmul.f32 %v245_v57, %v422_v13  ;;  %v257_v60 = vmul.f32 %v245_v57, %v420_v12  ;;  %v256_v61 = vmul.f32 %v245_v57, %v418_v11 }
  0x7b   :  { %v259_v62 = vmul.f32 %v247_v53, %v246_v59  ;;  %v251_v63 = vmul.f32 %v427_v15, %v246_v59  ;;  %v253_v0 = vmul.f32 %v431_v16, %v246_v59  ;;  %v271_v1 = vmul.f32 %v248_v55, %v246_v59 }
  0x7c   :  { %v255_v2 = vmul.f32 %v435_v18, %v246_v59  ;;  %v284_v3 = vmul.f32 %v249_v58, %v246_v59 }
  0x7d   :  { %v260_v4 = vadd.f32 %v259_v62, %v141_v56  ;;  %v262_v5 = vsub.f32 %v251_v63, %v258_v10  ;;  %v265_v6 = vadd.f32 %v257_v60, %v253_v0  ;;  %v268_v7 = vadd.f32 %v258_v10, %v251_v63 }
  0x7e   :  { %v272_v13 = vadd.f32 %v271_v1, %v141_v56  ;;  %v275_v8 = vsub.f32 %v255_v2, %v256_v61  ;;  %v278_v12 = vsub.f32 %v253_v0, %v257_v60  ;;  %v281_v9 = vadd.f32 %v256_v61, %v255_v2 }
  0x7f   :  { %261 = vst [vmem:[#allocation5] sm:$0xff] %v260_v4  ;;  %264 = vst [vmem:[#allocation5 + $0x8] sm:$0xff] %v262_v5  ;;  %v285_v11 = vadd.f32 %v284_v3, %v141_v56 }
  0x80   :  { %267 = vst [vmem:[#allocation5 + $0x10] sm:$0xff] %v265_v6  ;;  %270 = vst [vmem:[#allocation5 + $0x18] sm:$0xff] %v268_v7 }
  0x81   :  { %274 = vst [vmem:[#allocation5 + $0x20] sm:$0xff] %v272_v13  ;;  %277 = vst [vmem:[#allocation5 + $0x28] sm:$0xff] %v275_v8 }
  0x82   :  { %280 = vst [vmem:[#allocation5 + $0x30] sm:$0xff] %v278_v12  ;;  %283 = vst [vmem:[#allocation5 + $0x38] sm:$0xff] %v281_v9 }
  0x83   :  { %287 = vst [vmem:[#allocation5 + $0x40] sm:$0xff] %v285_v11 }
  0x84   :  { %366 = shalt.err (!%p363_p12)
}
  0x85   :  { %s367_s24 = scalar_lea.hbm %s483_s1, 1152 }
  0x86   :  { %p368_p13 = scmp.ne.s32.totalorder %s483_s1, %s367_s24  ;;  %p371_p0 = scmp.lt.u32.totalorder %s367_s24, %s483_s1 }
  0x88   :  { %p373_p1 = pnand %p371_p0, %p368_p13 }
  0x8a   :  { %376 = shalt.err (!%p373_p1)
}
  0x8b   :  { %299 = dma.vmem_to_hbm [thread:$0]  %s294_s20, 1152, %s483_s1, [#allocation4], %s382_s16, %s382_s16, %s383_s17  }
  0x8c   :  { %379 = dma.done.wait [#allocation4], 1152  }
  0x8d   :  { %380 = vsyncadd [#allocation4], 4294966144 }
  0x8e   :  { %303 = vsyncpa [#allocation3], 1 }
  0x8f   :  { %304 = vsyncpa [#allocation4], 1 }

</bundles_post_ra>
